<compile_context>
chip_gen: v7x
topology: tpu7x:2x2x1
jax: 0.10.0
libtpu: 0.0.40
codegen_flags: <defaults>
</compile_context>

<pallas_src>
import jax
import jax.numpy as jnp
import numpy as np
from jax import lax
from jax.experimental import pallas as pl
from jax.experimental.pallas import tpu as pltpu

_EPS = 1e-5


# ----------------------------------------------------------------------------
# Fused kernel: maxpool -> conv1 -> BN1+ReLU -> conv2 -> BN2+ReLU
# ----------------------------------------------------------------------------
def _down_conv_kernel(x_ref, band1_ref, band2_ref, red_ref, tile_ref,
                      g1_ref, be1_ref, g2_ref, be2_ref,
                      o_ref, pad1_ref, pad2_ref):
    n, _, hp, k1 = x_ref.shape          # (batch, 4 pool parities, hp, wp*cin)
    m = o_ref.shape[2]                  # wp*cout (lane-dense minor dim)
    cout = red_ref.shape[1]
    wp = m // cout
    inv_cnt = 1.0 / float(n * hp * wp)  # BN sample count per channel

    # ---- MaxPool2d(2, 2) ----------------------------------------------------
    # The wrapper pre-split the four 2x2 parities into dim 1, so the pool is
    # four dense whole-tile loads and three VPU maxima: no scratch round trip
    # and no strided / rolled relayouts inside the kernel.
    pooled = jnp.maximum(
        jnp.maximum(x_ref[:, 0, :, :], x_ref[:, 1, :, :]),
        jnp.maximum(x_ref[:, 2, :, :], x_ref[:, 3, :, :]))       # (n, hp, k1)

    # ---- Stage conv1 input: zero ONLY the two halo rows ---------------------
    pad1_ref[:, 0:1, :] = jnp.zeros((n, 1, k1), jnp.float32)
    pad1_ref[:, hp + 1:hp + 2, :] = jnp.zeros((n, 1, k1), jnp.float32)
    pad1_ref[:, 1:hp + 1, :] = pooled

    def conv3x3(pad_ref, band_ref):
        """3x3 'same' conv as 3 banded MXU matmuls per image.  Batch stays a
        separate dim, so every tap operand is a contiguous full-width 2-D row
        slice of the staging ref (sublane offset dy only) -- no cross-batch
        reshape/relayout.  TODO(synk): at production sizes accumulate into a
        VMEM scratch and stream row blocks instead of holding SSA values."""
        accs = []
        for b in range(n):                       # unrolled (tiny batch)
            acc = jnp.zeros((hp, m), jnp.float32)
            for dy in range(3):
                a = pad_ref[b, dy:dy + hp, :]    # (hp, k)
                acc = acc + jnp.dot(a, band_ref[dy],
                                    preferred_element_type=jnp.float32)
            accs.append(acc)
        return accs

    def bn_relu(accs, gamma_ref, beta_ref):
        """Training-mode BatchNorm (batch stats, biased variance) + ReLU, kept
        lane-dense via 0/1 reduce / tile matrices instead of an m x m Q.
        One-pass E[x^2]-E[x]^2 in f32 is fine at the test tolerance; switch to
        a two-pass formulation if bf16 staging is ever adopted."""
        s = jnp.zeros((1, m), jnp.float32)
        ss = jnp.zeros((1, m), jnp.float32)
        for acc in accs:                          # one-pass sum / sum-of-squares
            s = s + jnp.sum(acc, axis=0, keepdims=True)
            ss = ss + jnp.sum(acc * acc, axis=0, keepdims=True)
        # (1, m) @ (m, cout): sums every pixel slot of the same channel.
        # (Could be fused into one (2, m) push once stacked-operand concat is
        #  verified in the Mosaic dump; kept as two pushes for robustness.)
        s_c = jnp.dot(s, red_ref[...], preferred_element_type=jnp.float32)
        ss_c = jnp.dot(ss, red_ref[...], preferred_element_type=jnp.float32)
        mean_c = s_c * inv_cnt
        var_c = ss_c * inv_cnt - mean_c * mean_c      # biased var (PyTorch train)
        scale_c = gamma_ref[...] * lax.rsqrt(var_c + _EPS)
        shift_c = beta_ref[...] - mean_c * scale_c
        # Re-tile per-channel scale/shift across the wp*cout lane axis with a
        # (1, cout) @ (cout, m) push each: O(m*cout) instead of O(m^2).
        scale_m = jnp.dot(scale_c, tile_ref[...],
                          preferred_element_type=jnp.float32)     # (1, m)
        shift_m = jnp.dot(shift_c, tile_ref[...],
                          preferred_element_type=jnp.float32)     # (1, m)
        return [jnp.maximum(acc * scale_m + shift_m, 0.0) for acc in accs]

    act1 = bn_relu(conv3x3(pad1_ref, band1_ref), g1_ref, be1_ref)

    # ---- Stage conv2 input (halo-only zeroing again) -------------------------
    pad2_ref[:, 0:1, :] = jnp.zeros((n, 1, m), jnp.float32)
    pad2_ref[:, hp + 1:hp + 2, :] = jnp.zeros((n, 1, m), jnp.float32)
    for b in range(n):
        pad2_ref[b, 1:hp + 1, :] = act1[b]

    act2 = bn_relu(conv3x3(pad2_ref, band2_ref), g2_ref, be2_ref)
    for b in range(n):
        o_ref[b, :, :] = act2[b].astype(o_ref.dtype)


# ----------------------------------------------------------------------------
# Wrapper-side parameter prep + pallas_call
# ----------------------------------------------------------------------------
def _make_conv_bands(w_hwio, wp):
    """Fold a 3x3 'same' conv (incl. its horizontal zero padding) into three
    banded matrices B[dy] of shape (wp*Cin, wp*Cout).  A flattened pixel row
    (pixel-major, channel-minor) times B[dy] is that row's contribution for
    vertical tap dy.

    TODO(synk): at production widths, tile the band over width chunks with a
    1-pixel halo so band2 stays linear (not quadratic) in the pooled width and
    fits v7x's 64 MiB VMEM; align the tile's N dim to 256 (v6e/v7x) / 128 (v5e).
    """
    kh, kw, cin, cout = w_hwio.shape
    bands = []
    for dy in range(kh):
        acc = jnp.zeros((wp * cin, wp * cout), jnp.float32)
        for dx in range(kw):
            pat = np.zeros((wp, wp), np.float32)
            for j in range(wp):
                src = j + dx - 1
                if 0 <= src < wp:
                    pat[src, j] = 1.0
            acc = acc + jnp.kron(jnp.asarray(pat),
                                 w_hwio[dy, dx].astype(jnp.float32))
        bands.append(acc)
    return jnp.stack(bands)  # (3, wp*cin, wp*cout)


def down_conv_forward(x_nchw, params):
    """Down_Conv forward.  Input/output NCHW (PyTorch convention).

    TODO(synk): when chaining encoder blocks, keep activations in the kernel's
    flattened (n, hp, wp*cout) layout between blocks (folding the next block's
    pool-parity split into its kernel) instead of bouncing through NCHW; the
    boundary transposes here exist only to match the PyTorch interface.
    """
    n, cin, h, w = x_nchw.shape
    assert h % 2 == 0 and w % 2 == 0
    cout = params["w1"].shape[-1]
    hp, wp = h // 2, w // 2
    m = wp * cout

    # Single wrapper-side layout copy (XLA fuses the transpose+reshapes):
    # x_split[b, 2*q + p, r, j*cin + c] = x[b, c, 2*r + q, 2*j + p].
    x = jnp.transpose(x_nchw, (0, 2, 3, 1)).astype(jnp.float32)    # NHWC
    x = x.reshape(n, hp, 2, wp, 2, cin)
    x = jnp.transpose(x, (0, 2, 4, 1, 3, 5))                       # (n,2,2,hp,wp,cin)
    x_split = x.reshape(n, 4, hp, wp * cin)

    band1 = _make_conv_bands(params["w1"], wp)     # (3, wp*cin, m)
    band2 = _make_conv_bands(params["w2"], wp)     # (3, m, m)

    # 0/1 per-channel reduce (m, cout) and re-tile (cout, m) matrices.
    eye = jnp.eye(cout, dtype=jnp.float32)
    red_mat = jnp.tile(eye, (wp, 1))               # (m, cout)
    tile_mat = jnp.tile(eye, (1, wp))              # (cout, m)

    g1 = params["g1"].astype(jnp.float32).reshape(1, cout)
    be1 = params["be1"].astype(jnp.float32).reshape(1, cout)
    g2 = params["g2"].astype(jnp.float32).reshape(1, cout)
    be2 = params["be2"].astype(jnp.float32).reshape(1, cout)
    # NOTE: conv biases b1/b2 are intentionally NOT passed: training-mode
    # BatchNorm mean subtraction cancels them exactly (dead work removed).

    # TODO(synk): at production U-Net sizes, grid over batch / pooled-row
    # blocks with BlockSpec pipelining ('parallel' semantics to engage both
    # v7x TensorCores), split BN into a stats pass + normalize pass, and use
    # width-tiled bands so the working set respects v7x's 64 MiB VMEM.
    out_flat = pl.pallas_call(
        _down_conv_kernel,
        out_shape=jax.ShapeDtypeStruct((n, hp, m), jnp.float32),
        scratch_shapes=[
            pltpu.VMEM((n, hp + 2, wp * cin), jnp.float32),   # conv1 in + halo
            pltpu.VMEM((n, hp + 2, m), jnp.float32),          # conv2 in + halo
        ],
    )(x_split, band1, band2, red_mat, tile_mat, g1, be1, g2, be2)

    out = out_flat.reshape(n, hp, wp, cout)
    return jnp.transpose(out, (0, 3, 1, 2))          # flat -> NCHW (boundary only)


# ----------------------------------------------------------------------------
# Pure-JAX reference (for verification; includes the conv biases)
# ----------------------------------------------------------------------------
def _ref_forward(x_nchw, params):
    x = lax.reduce_window(
        x_nchw, -jnp.inf, lax.max,
        window_dimensions=(1, 1, 2, 2), window_strides=(1, 1, 2, 2),
        padding="VALID",
    )

    def conv(x, w_hwio, b):
        w_oihw = jnp.transpose(w_hwio, (3, 2, 0, 1))
        y = lax.conv_general_dilated(
            x, w_oihw, window_strides=(1, 1), padding=((1, 1), (1, 1)),
            dimension_numbers=("NCHW", "OIHW", "NCHW"),
        )
        return y + b.reshape(1, -1, 1, 1)

    def bn_relu(x, g, be):
        mean = jnp.mean(x, axis=(0, 2, 3), keepdims=True)
        var = jnp.mean(jnp.square(x - mean), axis=(0, 2, 3), keepdims=True)
        y = (x - mean) * lax.rsqrt(var + _EPS)
        y = y * g.reshape(1, -1, 1, 1) + be.reshape(1, -1, 1, 1)
        return jnp.maximum(y, 0.0)

    x = bn_relu(conv(x, params["w1"], params["b1"]), params["g1"], params["be1"])
    x = bn_relu(conv(x, params["w2"], params["b2"]), params["g2"], params["be2"])
    return x


# ----------------------------------------------------------------------------
# Main
# ----------------------------------------------------------------------------
if __name__ == "__main__":
    N, Cin, H, W = 2, 4, 16, 16
    Cout = 8

    key = jax.random.PRNGKey(0)
    (kx, kw1, kb1, kw2, kb2, kg1, kbe1, kg2, kbe2) = jax.random.split(key, 9)

    x = jax.random.normal(kx, (N, Cin, H, W), dtype=jnp.float32)

    params = {
        # Conv weights stored HWIO.
        "w1": 0.1 * jax.random.normal(kw1, (3, 3, Cin, Cout), dtype=jnp.float32),
        "b1": 0.1 * jax.random.normal(kb1, (Cout,), dtype=jnp.float32),
        "g1": 1.0 + 0.1 * jax.random.normal(kg1, (Cout,), dtype=jnp.float32),
        "be1": 0.1 * jax.random.normal(kbe1, (Cout,), dtype=jnp.float32),
        "w2": 0.1 * jax.random.normal(kw2, (3, 3, Cout, Cout), dtype=jnp.float32),
        "b2": 0.1 * jax.random.normal(kb2, (Cout,), dtype=jnp.float32),
        "g2": 1.0 + 0.1 * jax.random.normal(kg2, (Cout,), dtype=jnp.float32),
        "be2": 0.1 * jax.random.normal(kbe2, (Cout,), dtype=jnp.float32),
    }

    out = jax.block_until_ready(jax.jit(down_conv_forward)(x, params))
    ref = jax.block_until_ready(jax.jit(_ref_forward)(x, params))

    assert out.shape == (N, Cout, H // 2, W // 2), out.shape
    np.testing.assert_allclose(np.asarray(out), np.asarray(ref),
                               atol=1e-4, rtol=1e-4)

    print("KERNEL_OK")
</pallas_src>

<mosaic_0001>
module attributes {stable_mosaic.version = 11 : i64} {
  func.func @_down_conv_kernel(%arg0: memref<2x4x8x32xf32, #tpu.memory_space<vmem>>, %arg1: memref<3x32x64xf32, #tpu.memory_space<vmem>>, %arg2: memref<3x64x64xf32, #tpu.memory_space<vmem>>, %arg3: memref<64x8xf32, #tpu.memory_space<vmem>>, %arg4: memref<8x64xf32, #tpu.memory_space<vmem>>, %arg5: memref<1x8xf32, #tpu.memory_space<vmem>>, %arg6: memref<1x8xf32, #tpu.memory_space<vmem>>, %arg7: memref<1x8xf32, #tpu.memory_space<vmem>>, %arg8: memref<1x8xf32, #tpu.memory_space<vmem>>, %arg9: memref<2x8x64xf32, #tpu.memory_space<vmem>>, %arg10: memref<2x10x32xf32, #tpu.memory_space<vmem>>, %arg11: memref<2x10x64xf32, #tpu.memory_space<vmem>>) attributes {dimension_semantics = [], scalar_prefetch = 0 : i64, scratch_operands = 2 : i64, tpu.core_type = #tpu.core_type<tc>} {
    %c0 = arith.constant 0 : index
    %c0_0 = arith.constant 0 : index
    %c0_1 = arith.constant 0 : index
    %c0_2 = arith.constant 0 : index
    %0 = vector.load %arg0[%c0, %c0_0, %c0_1, %c0_2] : memref<2x4x8x32xf32, #tpu.memory_space<vmem>>, vector<2x1x8x32xf32>
    %1 = vector.shape_cast %0 : vector<2x1x8x32xf32> to vector<2x8x32xf32>
    %c0_3 = arith.constant 0 : index
    %c1 = arith.constant 1 : index
    %c0_4 = arith.constant 0 : index
    %c0_5 = arith.constant 0 : index
    %2 = vector.load %arg0[%c0_3, %c1, %c0_4, %c0_5] : memref<2x4x8x32xf32, #tpu.memory_space<vmem>>, vector<2x1x8x32xf32>
    %3 = vector.shape_cast %2 : vector<2x1x8x32xf32> to vector<2x8x32xf32>
    %4 = arith.maximumf %1, %3 : vector<2x8x32xf32>
    %c0_6 = arith.constant 0 : index
    %c2 = arith.constant 2 : index
    %c0_7 = arith.constant 0 : index
    %c0_8 = arith.constant 0 : index
    %5 = vector.load %arg0[%c0_6, %c2, %c0_7, %c0_8] : memref<2x4x8x32xf32, #tpu.memory_space<vmem>>, vector<2x1x8x32xf32>
    %6 = vector.shape_cast %5 : vector<2x1x8x32xf32> to vector<2x8x32xf32>
    %c0_9 = arith.constant 0 : index
    %c3 = arith.constant 3 : index
    %c0_10 = arith.constant 0 : index
    %c0_11 = arith.constant 0 : index
    %7 = vector.load %arg0[%c0_9, %c3, %c0_10, %c0_11] : memref<2x4x8x32xf32, #tpu.memory_space<vmem>>, vector<2x1x8x32xf32>
    %8 = vector.shape_cast %7 : vector<2x1x8x32xf32> to vector<2x8x32xf32>
    %9 = arith.maximumf %6, %8 : vector<2x8x32xf32>
    %10 = arith.maximumf %4, %9 : vector<2x8x32xf32>
    %cst = arith.constant 0.000000e+00 : f32
    %11 = vector.broadcast %cst : f32 to vector<2x1x32xf32>
    %c0_12 = arith.constant 0 : index
    %c0_13 = arith.constant 0 : index
    %c0_14 = arith.constant 0 : index
    %12 = vector.load %arg10[%c0_12, %c0_13, %c0_14] : memref<2x10x32xf32, #tpu.memory_space<vmem>>, vector<2x1x32xf32>
    tpu.vector_store %arg10[%c0_12, %c0_13, %c0_14], %11 {strides = array<i32>} : memref<2x10x32xf32, #tpu.memory_space<vmem>>, vector<2x1x32xf32>,
    %cst_15 = arith.constant 0.000000e+00 : f32
    %13 = vector.broadcast %cst_15 : f32 to vector<2x1x32xf32>
    %c0_16 = arith.constant 0 : index
    %c9 = arith.constant 9 : index
    %c0_17 = arith.constant 0 : index
    %14 = vector.load %arg10[%c0_16, %c9, %c0_17] : memref<2x10x32xf32, #tpu.memory_space<vmem>>, vector<2x1x32xf32>
    tpu.vector_store %arg10[%c0_16, %c9, %c0_17], %13 {strides = array<i32>} : memref<2x10x32xf32, #tpu.memory_space<vmem>>, vector<2x1x32xf32>,
    %c0_18 = arith.constant 0 : index
    %c1_19 = arith.constant 1 : index
    %c0_20 = arith.constant 0 : index
    %15 = vector.load %arg10[%c0_18, %c1_19, %c0_20] : memref<2x10x32xf32, #tpu.memory_space<vmem>>, vector<2x8x32xf32>
    tpu.vector_store %arg10[%c0_18, %c1_19, %c0_20], %10 {strides = array<i32>} : memref<2x10x32xf32, #tpu.memory_space<vmem>>, vector<2x8x32xf32>,
    %cst_21 = arith.constant 0.000000e+00 : f32
    %16 = vector.broadcast %cst_21 : f32 to vector<8x64xf32>
    %c0_22 = arith.constant 0 : index
    %c0_23 = arith.constant 0 : index
    %c0_24 = arith.constant 0 : index
    %17 = vector.load %arg10[%c0_22, %c0_23, %c0_24] : memref<2x10x32xf32, #tpu.memory_space<vmem>>, vector<1x8x32xf32>
    %18 = vector.shape_cast %17 : vector<1x8x32xf32> to vector<8x32xf32>
    %c0_25 = arith.constant 0 : index
    %c0_26 = arith.constant 0 : index
    %c0_27 = arith.constant 0 : index
    %19 = vector.load %arg1[%c0_25, %c0_26, %c0_27] : memref<3x32x64xf32, #tpu.memory_space<vmem>>, vector<1x32x64xf32>
    %20 = vector.shape_cast %19 : vector<1x32x64xf32> to vector<32x64xf32>
    %cst_28 = arith.constant dense<0.000000e+00> : vector<8x64xf32>
    %21 = tpu.matmul %18, %20, %cst_28 {dimension_numbers = #tpu.dot_dimension_numbers<[1], [0], [0], [1], [0, 0, 1, 1], [], []>} : vector<8x32xf32>, vector<32x64xf32>, vector<8x64xf32> -> vector<8x64xf32>
    %22 = arith.addf %16, %21 : vector<8x64xf32>
    %c0_29 = arith.constant 0 : index
    %c1_30 = arith.constant 1 : index
    %c0_31 = arith.constant 0 : index
    %23 = vector.load %arg10[%c0_29, %c1_30, %c0_31] : memref<2x10x32xf32, #tpu.memory_space<vmem>>, vector<1x8x32xf32>
    %24 = vector.shape_cast %23 : vector<1x8x32xf32> to vector<8x32xf32>
    %c1_32 = arith.constant 1 : index
    %c0_33 = arith.constant 0 : index
    %c0_34 = arith.constant 0 : index
    %25 = vector.load %arg1[%c1_32, %c0_33, %c0_34] : memref<3x32x64xf32, #tpu.memory_space<vmem>>, vector<1x32x64xf32>
    %26 = vector.shape_cast %25 : vector<1x32x64xf32> to vector<32x64xf32>
    %cst_35 = arith.constant dense<0.000000e+00> : vector<8x64xf32>
    %27 = tpu.matmul %24, %26, %cst_35 {dimension_numbers = #tpu.dot_dimension_numbers<[1], [0], [0], [1], [0, 0, 1, 1], [], []>} : vector<8x32xf32>, vector<32x64xf32>, vector<8x64xf32> -> vector<8x64xf32>
    %28 = arith.addf %22, %27 : vector<8x64xf32>
    %c0_36 = arith.constant 0 : index
    %c2_37 = arith.constant 2 : index
    %c0_38 = arith.constant 0 : index
    %29 = vector.load %arg10[%c0_36, %c2_37, %c0_38] : memref<2x10x32xf32, #tpu.memory_space<vmem>>, vector<1x8x32xf32>
    %30 = vector.shape_cast %29 : vector<1x8x32xf32> to vector<8x32xf32>
    %c2_39 = arith.constant 2 : index
    %c0_40 = arith.constant 0 : index
    %c0_41 = arith.constant 0 : index
    %31 = vector.load %arg1[%c2_39, %c0_40, %c0_41] : memref<3x32x64xf32, #tpu.memory_space<vmem>>, vector<1x32x64xf32>
    %32 = vector.shape_cast %31 : vector<1x32x64xf32> to vector<32x64xf32>
    %cst_42 = arith.constant dense<0.000000e+00> : vector<8x64xf32>
    %33 = tpu.matmul %30, %32, %cst_42 {dimension_numbers = #tpu.dot_dimension_numbers<[1], [0], [0], [1], [0, 0, 1, 1], [], []>} : vector<8x32xf32>, vector<32x64xf32>, vector<8x64xf32> -> vector<8x64xf32>
    %34 = arith.addf %28, %33 : vector<8x64xf32>
    %cst_43 = arith.constant 0.000000e+00 : f32
    %35 = vector.broadcast %cst_43 : f32 to vector<8x64xf32>
    %c1_44 = arith.constant 1 : index
    %c0_45 = arith.constant 0 : index
    %c0_46 = arith.constant 0 : index
    %36 = vector.load %arg10[%c1_44, %c0_45, %c0_46] : memref<2x10x32xf32, #tpu.memory_space<vmem>>, vector<1x8x32xf32>
    %37 = vector.shape_cast %36 : vector<1x8x32xf32> to vector<8x32xf32>
    %c0_47 = arith.constant 0 : index
    %c0_48 = arith.constant 0 : index
    %c0_49 = arith.constant 0 : index
    %38 = vector.load %arg1[%c0_47, %c0_48, %c0_49] : memref<3x32x64xf32, #tpu.memory_space<vmem>>, vector<1x32x64xf32>
    %39 = vector.shape_cast %38 : vector<1x32x64xf32> to vector<32x64xf32>
    %cst_50 = arith.constant dense<0.000000e+00> : vector<8x64xf32>
    %40 = tpu.matmul %37, %39, %cst_50 {dimension_numbers = #tpu.dot_dimension_numbers<[1], [0], [0], [1], [0, 0, 1, 1], [], []>} : vector<8x32xf32>, vector<32x64xf32>, vector<8x64xf32> -> vector<8x64xf32>
    %41 = arith.addf %35, %40 : vector<8x64xf32>
    %c1_51 = arith.constant 1 : index
    %c1_52 = arith.constant 1 : index
    %c0_53 = arith.constant 0 : index
    %42 = vector.load %arg10[%c1_51, %c1_52, %c0_53] : memref<2x10x32xf32, #tpu.memory_space<vmem>>, vector<1x8x32xf32>
    %43 = vector.shape_cast %42 : vector<1x8x32xf32> to vector<8x32xf32>
    %c1_54 = arith.constant 1 : index
    %c0_55 = arith.constant 0 : index
    %c0_56 = arith.constant 0 : index
    %44 = vector.load %arg1[%c1_54, %c0_55, %c0_56] : memref<3x32x64xf32, #tpu.memory_space<vmem>>, vector<1x32x64xf32>
    %45 = vector.shape_cast %44 : vector<1x32x64xf32> to vector<32x64xf32>
    %cst_57 = arith.constant dense<0.000000e+00> : vector<8x64xf32>
    %46 = tpu.matmul %43, %45, %cst_57 {dimension_numbers = #tpu.dot_dimension_numbers<[1], [0], [0], [1], [0, 0, 1, 1], [], []>} : vector<8x32xf32>, vector<32x64xf32>, vector<8x64xf32> -> vector<8x64xf32>
    %47 = arith.addf %41, %46 : vector<8x64xf32>
    %c1_58 = arith.constant 1 : index
    %c2_59 = arith.constant 2 : index
    %c0_60 = arith.constant 0 : index
    %48 = vector.load %arg10[%c1_58, %c2_59, %c0_60] : memref<2x10x32xf32, #tpu.memory_space<vmem>>, vector<1x8x32xf32>
    %49 = vector.shape_cast %48 : vector<1x8x32xf32> to vector<8x32xf32>
    %c2_61 = arith.constant 2 : index
    %c0_62 = arith.constant 0 : index
    %c0_63 = arith.constant 0 : index
    %50 = vector.load %arg1[%c2_61, %c0_62, %c0_63] : memref<3x32x64xf32, #tpu.memory_space<vmem>>, vector<1x32x64xf32>
    %51 = vector.shape_cast %50 : vector<1x32x64xf32> to vector<32x64xf32>
    %cst_64 = arith.constant dense<0.000000e+00> : vector<8x64xf32>
    %52 = tpu.matmul %49, %51, %cst_64 {dimension_numbers = #tpu.dot_dimension_numbers<[1], [0], [0], [1], [0, 0, 1, 1], [], []>} : vector<8x32xf32>, vector<32x64xf32>, vector<8x64xf32> -> vector<8x64xf32>
    %53 = arith.addf %47, %52 : vector<8x64xf32>
    %cst_65 = arith.constant 0.000000e+00 : f32
    %54 = vector.broadcast %cst_65 : f32 to vector<1x64xf32>
    %cst_66 = arith.constant 0.000000e+00 : f32
    %55 = vector.broadcast %cst_66 : f32 to vector<1x64xf32>
    %cst_67 = arith.constant dense<0.000000e+00> : vector<64xf32>
    %56 = vector.multi_reduction <add>, %34, %cst_67 [0] : vector<8x64xf32> to vector<64xf32>
    %57 = vector.shape_cast %56 : vector<64xf32> to vector<1x64xf32>
    %58 = arith.addf %54, %57 : vector<1x64xf32>
    %59 = arith.mulf %34, %34 : vector<8x64xf32>
    %cst_68 = arith.constant dense<0.000000e+00> : vector<64xf32>
    %60 = vector.multi_reduction <add>, %59, %cst_68 [0] : vector<8x64xf32> to vector<64xf32>
    %61 = vector.shape_cast %60 : vector<64xf32> to vector<1x64xf32>
    %62 = arith.addf %55, %61 : vector<1x64xf32>
    %cst_69 = arith.constant dense<0.000000e+00> : vector<64xf32>
    %63 = vector.multi_reduction <add>, %53, %cst_69 [0] : vector<8x64xf32> to vector<64xf32>
    %64 = vector.shape_cast %63 : vector<64xf32> to vector<1x64xf32>
    %65 = arith.addf %58, %64 : vector<1x64xf32>
    %66 = arith.mulf %53, %53 : vector<8x64xf32>
    %cst_70 = arith.constant dense<0.000000e+00> : vector<64xf32>
    %67 = vector.multi_reduction <add>, %66, %cst_70 [0] : vector<8x64xf32> to vector<64xf32>
    %68 = vector.shape_cast %67 : vector<64xf32> to vector<1x64xf32>
    %69 = arith.addf %62, %68 : vector<1x64xf32>
    %c0_71 = arith.constant 0 : index
    %c0_72 = arith.constant 0 : index
    %70 = vector.load %arg3[%c0_71, %c0_72] : memref<64x8xf32, #tpu.memory_space<vmem>>, vector<64x8xf32>
    %cst_73 = arith.constant dense<0.000000e+00> : vector<1x8xf32>
    %71 = tpu.matmul %65, %70, %cst_73 {dimension_numbers = #tpu.dot_dimension_numbers<[1], [0], [0], [1], [0, 0, 1, 1], [], []>} : vector<1x64xf32>, vector<64x8xf32>, vector<1x8xf32> -> vector<1x8xf32>
    %c0_74 = arith.constant 0 : index
    %c0_75 = arith.constant 0 : index
    %72 = vector.load %arg3[%c0_74, %c0_75] : memref<64x8xf32, #tpu.memory_space<vmem>>, vector<64x8xf32>
    %cst_76 = arith.constant dense<0.000000e+00> : vector<1x8xf32>
    %73 = tpu.matmul %69, %72, %cst_76 {dimension_numbers = #tpu.dot_dimension_numbers<[1], [0], [0], [1], [0, 0, 1, 1], [], []>} : vector<1x64xf32>, vector<64x8xf32>, vector<1x8xf32> -> vector<1x8xf32>
    %cst_77 = arith.constant 7.812500e-03 : f32
    %74 = vector.broadcast %cst_77 : f32 to vector<1x8xf32>
    %75 = arith.mulf %71, %74 : vector<1x8xf32>
    %cst_78 = arith.constant 7.812500e-03 : f32
    %76 = vector.broadcast %cst_78 : f32 to vector<1x8xf32>
    %77 = arith.mulf %73, %76 : vector<1x8xf32>
    %78 = arith.mulf %75, %75 : vector<1x8xf32>
    %79 = arith.subf %77, %78 : vector<1x8xf32>
    %c0_79 = arith.constant 0 : index
    %c0_80 = arith.constant 0 : index
    %80 = vector.load %arg5[%c0_79, %c0_80] : memref<1x8xf32, #tpu.memory_space<vmem>>, vector<1x8xf32>
    %cst_81 = arith.constant 9.99999974E-6 : f32
    %81 = vector.broadcast %cst_81 : f32 to vector<1x8xf32>
    %82 = arith.addf %79, %81 : vector<1x8xf32>
    %83 = math.rsqrt %82 : vector<1x8xf32>
    %84 = arith.mulf %80, %83 : vector<1x8xf32>
    %c0_82 = arith.constant 0 : index
    %c0_83 = arith.constant 0 : index
    %85 = vector.load %arg6[%c0_82, %c0_83] : memref<1x8xf32, #tpu.memory_space<vmem>>, vector<1x8xf32>
    %86 = arith.mulf %75, %84 : vector<1x8xf32>
    %87 = arith.subf %85, %86 : vector<1x8xf32>
    %c0_84 = arith.constant 0 : index
    %c0_85 = arith.constant 0 : index
    %88 = vector.load %arg4[%c0_84, %c0_85] : memref<8x64xf32, #tpu.memory_space<vmem>>, vector<8x64xf32>
    %cst_86 = arith.constant dense<0.000000e+00> : vector<1x64xf32>
    %89 = tpu.matmul %84, %88, %cst_86 {dimension_numbers = #tpu.dot_dimension_numbers<[1], [0], [0], [1], [0, 0, 1, 1], [], []>} : vector<1x8xf32>, vector<8x64xf32>, vector<1x64xf32> -> vector<1x64xf32>
    %c0_87 = arith.constant 0 : index
    %c0_88 = arith.constant 0 : index
    %90 = vector.load %arg4[%c0_87, %c0_88] : memref<8x64xf32, #tpu.memory_space<vmem>>, vector<8x64xf32>
    %cst_89 = arith.constant dense<0.000000e+00> : vector<1x64xf32>
    %91 = tpu.matmul %87, %90, %cst_89 {dimension_numbers = #tpu.dot_dimension_numbers<[1], [0], [0], [1], [0, 0, 1, 1], [], []>} : vector<1x8xf32>, vector<8x64xf32>, vector<1x64xf32> -> vector<1x64xf32>
    %92 = vector.broadcast %89 : vector<1x64xf32> to vector<8x64xf32>
    %93 = arith.mulf %34, %92 : vector<8x64xf32>
    %94 = vector.broadcast %91 : vector<1x64xf32> to vector<8x64xf32>
    %95 = arith.addf %93, %94 : vector<8x64xf32>
    %cst_90 = arith.constant 0.000000e+00 : f32
    %96 = vector.broadcast %cst_90 : f32 to vector<8x64xf32>
    %97 = arith.maximumf %95, %96 : vector<8x64xf32>
    %98 = vector.broadcast %89 : vector<1x64xf32> to vector<8x64xf32>
    %99 = arith.mulf %53, %98 : vector<8x64xf32>
    %100 = vector.broadcast %91 : vector<1x64xf32> to vector<8x64xf32>
    %101 = arith.addf %99, %100 : vector<8x64xf32>
    %cst_91 = arith.constant 0.000000e+00 : f32
    %102 = vector.broadcast %cst_91 : f32 to vector<8x64xf32>
    %103 = arith.maximumf %101, %102 : vector<8x64xf32>
    %cst_92 = arith.constant 0.000000e+00 : f32
    %104 = vector.broadcast %cst_92 : f32 to vector<2x1x64xf32>
    %c0_93 = arith.constant 0 : index
    %c0_94 = arith.constant 0 : index
    %c0_95 = arith.constant 0 : index
    %105 = vector.load %arg11[%c0_93, %c0_94, %c0_95] : memref<2x10x64xf32, #tpu.memory_space<vmem>>, vector<2x1x64xf32>
    tpu.vector_store %arg11[%c0_93, %c0_94, %c0_95], %104 {strides = array<i32>} : memref<2x10x64xf32, #tpu.memory_space<vmem>>, vector<2x1x64xf32>,
    %cst_96 = arith.constant 0.000000e+00 : f32
    %106 = vector.broadcast %cst_96 : f32 to vector<2x1x64xf32>
    %c0_97 = arith.constant 0 : index
    %c9_98 = arith.constant 9 : index
    %c0_99 = arith.constant 0 : index
    %107 = vector.load %arg11[%c0_97, %c9_98, %c0_99] : memref<2x10x64xf32, #tpu.memory_space<vmem>>, vector<2x1x64xf32>
    tpu.vector_store %arg11[%c0_97, %c9_98, %c0_99], %106 {strides = array<i32>} : memref<2x10x64xf32, #tpu.memory_space<vmem>>, vector<2x1x64xf32>,
    %c0_100 = arith.constant 0 : index
    %c1_101 = arith.constant 1 : index
    %c0_102 = arith.constant 0 : index
    %108 = vector.load %arg11[%c0_100, %c1_101, %c0_102] : memref<2x10x64xf32, #tpu.memory_space<vmem>>, vector<1x8x64xf32>
    %109 = vector.shape_cast %108 : vector<1x8x64xf32> to vector<8x64xf32>
    %110 = vector.shape_cast %97 : vector<8x64xf32> to vector<1x8x64xf32>
    tpu.vector_store %arg11[%c0_100, %c1_101, %c0_102], %110 {strides = array<i32>} : memref<2x10x64xf32, #tpu.memory_space<vmem>>, vector<1x8x64xf32>,
    %c1_103 = arith.constant 1 : index
    %c1_104 = arith.constant 1 : index
    %c0_105 = arith.constant 0 : index
    %111 = vector.load %arg11[%c1_103, %c1_104, %c0_105] : memref<2x10x64xf32, #tpu.memory_space<vmem>>, vector<1x8x64xf32>
    %112 = vector.shape_cast %111 : vector<1x8x64xf32> to vector<8x64xf32>
    %113 = vector.shape_cast %103 : vector<8x64xf32> to vector<1x8x64xf32>
    tpu.vector_store %arg11[%c1_103, %c1_104, %c0_105], %113 {strides = array<i32>} : memref<2x10x64xf32, #tpu.memory_space<vmem>>, vector<1x8x64xf32>,
    %cst_106 = arith.constant 0.000000e+00 : f32
    %114 = vector.broadcast %cst_106 : f32 to vector<8x64xf32>
    %c0_107 = arith.constant 0 : index
    %c0_108 = arith.constant 0 : index
    %c0_109 = arith.constant 0 : index
    %115 = vector.load %arg11[%c0_107, %c0_108, %c0_109] : memref<2x10x64xf32, #tpu.memory_space<vmem>>, vector<1x8x64xf32>
    %116 = vector.shape_cast %115 : vector<1x8x64xf32> to vector<8x64xf32>
    %c0_110 = arith.constant 0 : index
    %c0_111 = arith.constant 0 : index
    %c0_112 = arith.constant 0 : index
    %117 = vector.load %arg2[%c0_110, %c0_111, %c0_112] : memref<3x64x64xf32, #tpu.memory_space<vmem>>, vector<1x64x64xf32>
    %118 = vector.shape_cast %117 : vector<1x64x64xf32> to vector<64x64xf32>
    %cst_113 = arith.constant dense<0.000000e+00> : vector<8x64xf32>
    %119 = tpu.matmul %116, %118, %cst_113 {dimension_numbers = #tpu.dot_dimension_numbers<[1], [0], [0], [1], [0, 0, 1, 1], [], []>} : vector<8x64xf32>, vector<64x64xf32>, vector<8x64xf32> -> vector<8x64xf32>
    %120 = arith.addf %114, %119 : vector<8x64xf32>
    %c0_114 = arith.constant 0 : index
    %c1_115 = arith.constant 1 : index
    %c0_116 = arith.constant 0 : index
    %121 = vector.load %arg11[%c0_114, %c1_115, %c0_116] : memref<2x10x64xf32, #tpu.memory_space<vmem>>, vector<1x8x64xf32>
    %122 = vector.shape_cast %121 : vector<1x8x64xf32> to vector<8x64xf32>
    %c1_117 = arith.constant 1 : index
    %c0_118 = arith.constant 0 : index
    %c0_119 = arith.constant 0 : index
    %123 = vector.load %arg2[%c1_117, %c0_118, %c0_119] : memref<3x64x64xf32, #tpu.memory_space<vmem>>, vector<1x64x64xf32>
    %124 = vector.shape_cast %123 : vector<1x64x64xf32> to vector<64x64xf32>
    %cst_120 = arith.constant dense<0.000000e+00> : vector<8x64xf32>
    %125 = tpu.matmul %122, %124, %cst_120 {dimension_numbers = #tpu.dot_dimension_numbers<[1], [0], [0], [1], [0, 0, 1, 1], [], []>} : vector<8x64xf32>, vector<64x64xf32>, vector<8x64xf32> -> vector<8x64xf32>
    %126 = arith.addf %120, %125 : vector<8x64xf32>
    %c0_121 = arith.constant 0 : index
    %c2_122 = arith.constant 2 : index
    %c0_123 = arith.constant 0 : index
    %127 = vector.load %arg11[%c0_121, %c2_122, %c0_123] : memref<2x10x64xf32, #tpu.memory_space<vmem>>, vector<1x8x64xf32>
    %128 = vector.shape_cast %127 : vector<1x8x64xf32> to vector<8x64xf32>
    %c2_124 = arith.constant 2 : index
    %c0_125 = arith.constant 0 : index
    %c0_126 = arith.constant 0 : index
    %129 = vector.load %arg2[%c2_124, %c0_125, %c0_126] : memref<3x64x64xf32, #tpu.memory_space<vmem>>, vector<1x64x64xf32>
    %130 = vector.shape_cast %129 : vector<1x64x64xf32> to vector<64x64xf32>
    %cst_127 = arith.constant dense<0.000000e+00> : vector<8x64xf32>
    %131 = tpu.matmul %128, %130, %cst_127 {dimension_numbers = #tpu.dot_dimension_numbers<[1], [0], [0], [1], [0, 0, 1, 1], [], []>} : vector<8x64xf32>, vector<64x64xf32>, vector<8x64xf32> -> vector<8x64xf32>
    %132 = arith.addf %126, %131 : vector<8x64xf32>
    %cst_128 = arith.constant 0.000000e+00 : f32
    %133 = vector.broadcast %cst_128 : f32 to vector<8x64xf32>
    %c1_129 = arith.constant 1 : index
    %c0_130 = arith.constant 0 : index
    %c0_131 = arith.constant 0 : index
    %134 = vector.load %arg11[%c1_129, %c0_130, %c0_131] : memref<2x10x64xf32, #tpu.memory_space<vmem>>, vector<1x8x64xf32>
    %135 = vector.shape_cast %134 : vector<1x8x64xf32> to vector<8x64xf32>
    %c0_132 = arith.constant 0 : index
    %c0_133 = arith.constant 0 : index
    %c0_134 = arith.constant 0 : index
    %136 = vector.load %arg2[%c0_132, %c0_133, %c0_134] : memref<3x64x64xf32, #tpu.memory_space<vmem>>, vector<1x64x64xf32>
    %137 = vector.shape_cast %136 : vector<1x64x64xf32> to vector<64x64xf32>
    %cst_135 = arith.constant dense<0.000000e+00> : vector<8x64xf32>
    %138 = tpu.matmul %135, %137, %cst_135 {dimension_numbers = #tpu.dot_dimension_numbers<[1], [0], [0], [1], [0, 0, 1, 1], [], []>} : vector<8x64xf32>, vector<64x64xf32>, vector<8x64xf32> -> vector<8x64xf32>
    %139 = arith.addf %133, %138 : vector<8x64xf32>
    %c1_136 = arith.constant 1 : index
    %c1_137 = arith.constant 1 : index
    %c0_138 = arith.constant 0 : index
    %140 = vector.load %arg11[%c1_136, %c1_137, %c0_138] : memref<2x10x64xf32, #tpu.memory_space<vmem>>, vector<1x8x64xf32>
    %141 = vector.shape_cast %140 : vector<1x8x64xf32> to vector<8x64xf32>
    %c1_139 = arith.constant 1 : index
    %c0_140 = arith.constant 0 : index
    %c0_141 = arith.constant 0 : index
    %142 = vector.load %arg2[%c1_139, %c0_140, %c0_141] : memref<3x64x64xf32, #tpu.memory_space<vmem>>, vector<1x64x64xf32>
    %143 = vector.shape_cast %142 : vector<1x64x64xf32> to vector<64x64xf32>
    %cst_142 = arith.constant dense<0.000000e+00> : vector<8x64xf32>
    %144 = tpu.matmul %141, %143, %cst_142 {dimension_numbers = #tpu.dot_dimension_numbers<[1], [0], [0], [1], [0, 0, 1, 1], [], []>} : vector<8x64xf32>, vector<64x64xf32>, vector<8x64xf32> -> vector<8x64xf32>
    %145 = arith.addf %139, %144 : vector<8x64xf32>
    %c1_143 = arith.constant 1 : index
    %c2_144 = arith.constant 2 : index
    %c0_145 = arith.constant 0 : index
    %146 = vector.load %arg11[%c1_143, %c2_144, %c0_145] : memref<2x10x64xf32, #tpu.memory_space<vmem>>, vector<1x8x64xf32>
    %147 = vector.shape_cast %146 : vector<1x8x64xf32> to vector<8x64xf32>
    %c2_146 = arith.constant 2 : index
    %c0_147 = arith.constant 0 : index
    %c0_148 = arith.constant 0 : index
    %148 = vector.load %arg2[%c2_146, %c0_147, %c0_148] : memref<3x64x64xf32, #tpu.memory_space<vmem>>, vector<1x64x64xf32>
    %149 = vector.shape_cast %148 : vector<1x64x64xf32> to vector<64x64xf32>
    %cst_149 = arith.constant dense<0.000000e+00> : vector<8x64xf32>
    %150 = tpu.matmul %147, %149, %cst_149 {dimension_numbers = #tpu.dot_dimension_numbers<[1], [0], [0], [1], [0, 0, 1, 1], [], []>} : vector<8x64xf32>, vector<64x64xf32>, vector<8x64xf32> -> vector<8x64xf32>
    %151 = arith.addf %145, %150 : vector<8x64xf32>
    %cst_150 = arith.constant 0.000000e+00 : f32
    %152 = vector.broadcast %cst_150 : f32 to vector<1x64xf32>
    %cst_151 = arith.constant 0.000000e+00 : f32
    %153 = vector.broadcast %cst_151 : f32 to vector<1x64xf32>
    %cst_152 = arith.constant dense<0.000000e+00> : vector<64xf32>
    %154 = vector.multi_reduction <add>, %132, %cst_152 [0] : vector<8x64xf32> to vector<64xf32>
    %155 = vector.shape_cast %154 : vector<64xf32> to vector<1x64xf32>
    %156 = arith.addf %152, %155 : vector<1x64xf32>
    %157 = arith.mulf %132, %132 : vector<8x64xf32>
    %cst_153 = arith.constant dense<0.000000e+00> : vector<64xf32>
    %158 = vector.multi_reduction <add>, %157, %cst_153 [0] : vector<8x64xf32> to vector<64xf32>
    %159 = vector.shape_cast %158 : vector<64xf32> to vector<1x64xf32>
    %160 = arith.addf %153, %159 : vector<1x64xf32>
    %cst_154 = arith.constant dense<0.000000e+00> : vector<64xf32>
    %161 = vector.multi_reduction <add>, %151, %cst_154 [0] : vector<8x64xf32> to vector<64xf32>
    %162 = vector.shape_cast %161 : vector<64xf32> to vector<1x64xf32>
    %163 = arith.addf %156, %162 : vector<1x64xf32>
    %164 = arith.mulf %151, %151 : vector<8x64xf32>
    %cst_155 = arith.constant dense<0.000000e+00> : vector<64xf32>
    %165 = vector.multi_reduction <add>, %164, %cst_155 [0] : vector<8x64xf32> to vector<64xf32>
    %166 = vector.shape_cast %165 : vector<64xf32> to vector<1x64xf32>
    %167 = arith.addf %160, %166 : vector<1x64xf32>
    %c0_156 = arith.constant 0 : index
    %c0_157 = arith.constant 0 : index
    %168 = vector.load %arg3[%c0_156, %c0_157] : memref<64x8xf32, #tpu.memory_space<vmem>>, vector<64x8xf32>
    %cst_158 = arith.constant dense<0.000000e+00> : vector<1x8xf32>
    %169 = tpu.matmul %163, %168, %cst_158 {dimension_numbers = #tpu.dot_dimension_numbers<[1], [0], [0], [1], [0, 0, 1, 1], [], []>} : vector<1x64xf32>, vector<64x8xf32>, vector<1x8xf32> -> vector<1x8xf32>
    %c0_159 = arith.constant 0 : index
    %c0_160 = arith.constant 0 : index
    %170 = vector.load %arg3[%c0_159, %c0_160] : memref<64x8xf32, #tpu.memory_space<vmem>>, vector<64x8xf32>
    %cst_161 = arith.constant dense<0.000000e+00> : vector<1x8xf32>
    %171 = tpu.matmul %167, %170, %cst_161 {dimension_numbers = #tpu.dot_dimension_numbers<[1], [0], [0], [1], [0, 0, 1, 1], [], []>} : vector<1x64xf32>, vector<64x8xf32>, vector<1x8xf32> -> vector<1x8xf32>
    %cst_162 = arith.constant 7.812500e-03 : f32
    %172 = vector.broadcast %cst_162 : f32 to vector<1x8xf32>
    %173 = arith.mulf %169, %172 : vector<1x8xf32>
    %cst_163 = arith.constant 7.812500e-03 : f32
    %174 = vector.broadcast %cst_163 : f32 to vector<1x8xf32>
    %175 = arith.mulf %171, %174 : vector<1x8xf32>
    %176 = arith.mulf %173, %173 : vector<1x8xf32>
    %177 = arith.subf %175, %176 : vector<1x8xf32>
    %c0_164 = arith.constant 0 : index
    %c0_165 = arith.constant 0 : index
    %178 = vector.load %arg7[%c0_164, %c0_165] : memref<1x8xf32, #tpu.memory_space<vmem>>, vector<1x8xf32>
    %cst_166 = arith.constant 9.99999974E-6 : f32
    %179 = vector.broadcast %cst_166 : f32 to vector<1x8xf32>
    %180 = arith.addf %177, %179 : vector<1x8xf32>
    %181 = math.rsqrt %180 : vector<1x8xf32>
    %182 = arith.mulf %178, %181 : vector<1x8xf32>
    %c0_167 = arith.constant 0 : index
    %c0_168 = arith.constant 0 : index
    %183 = vector.load %arg8[%c0_167, %c0_168] : memref<1x8xf32, #tpu.memory_space<vmem>>, vector<1x8xf32>
    %184 = arith.mulf %173, %182 : vector<1x8xf32>
    %185 = arith.subf %183, %184 : vector<1x8xf32>
    %c0_169 = arith.constant 0 : index
    %c0_170 = arith.constant 0 : index
    %186 = vector.load %arg4[%c0_169, %c0_170] : memref<8x64xf32, #tpu.memory_space<vmem>>, vector<8x64xf32>
    %cst_171 = arith.constant dense<0.000000e+00> : vector<1x64xf32>
    %187 = tpu.matmul %182, %186, %cst_171 {dimension_numbers = #tpu.dot_dimension_numbers<[1], [0], [0], [1], [0, 0, 1, 1], [], []>} : vector<1x8xf32>, vector<8x64xf32>, vector<1x64xf32> -> vector<1x64xf32>
    %c0_172 = arith.constant 0 : index
    %c0_173 = arith.constant 0 : index
    %188 = vector.load %arg4[%c0_172, %c0_173] : memref<8x64xf32, #tpu.memory_space<vmem>>, vector<8x64xf32>
    %cst_174 = arith.constant dense<0.000000e+00> : vector<1x64xf32>
    %189 = tpu.matmul %185, %188, %cst_174 {dimension_numbers = #tpu.dot_dimension_numbers<[1], [0], [0], [1], [0, 0, 1, 1], [], []>} : vector<1x8xf32>, vector<8x64xf32>, vector<1x64xf32> -> vector<1x64xf32>
    %190 = vector.broadcast %187 : vector<1x64xf32> to vector<8x64xf32>
    %191 = arith.mulf %132, %190 : vector<8x64xf32>
    %192 = vector.broadcast %189 : vector<1x64xf32> to vector<8x64xf32>
    %193 = arith.addf %191, %192 : vector<8x64xf32>
    %cst_175 = arith.constant 0.000000e+00 : f32
    %194 = vector.broadcast %cst_175 : f32 to vector<8x64xf32>
    %195 = arith.maximumf %193, %194 : vector<8x64xf32>
    %196 = vector.broadcast %187 : vector<1x64xf32> to vector<8x64xf32>
    %197 = arith.mulf %151, %196 : vector<8x64xf32>
    %198 = vector.broadcast %189 : vector<1x64xf32> to vector<8x64xf32>
    %199 = arith.addf %197, %198 : vector<8x64xf32>
    %cst_176 = arith.constant 0.000000e+00 : f32
    %200 = vector.broadcast %cst_176 : f32 to vector<8x64xf32>
    %201 = arith.maximumf %199, %200 : vector<8x64xf32>
    %c0_177 = arith.constant 0 : index
    %c0_178 = arith.constant 0 : index
    %c0_179 = arith.constant 0 : index
    %202 = vector.load %arg9[%c0_177, %c0_178, %c0_179] : memref<2x8x64xf32, #tpu.memory_space<vmem>>, vector<1x8x64xf32>
    %203 = vector.shape_cast %202 : vector<1x8x64xf32> to vector<8x64xf32>
    %204 = vector.shape_cast %195 : vector<8x64xf32> to vector<1x8x64xf32>
    tpu.vector_store %arg9[%c0_177, %c0_178, %c0_179], %204 {strides = array<i32>} : memref<2x8x64xf32, #tpu.memory_space<vmem>>, vector<1x8x64xf32>,
    %c1_180 = arith.constant 1 : index
    %c0_181 = arith.constant 0 : index
    %c0_182 = arith.constant 0 : index
    %205 = vector.load %arg9[%c1_180, %c0_181, %c0_182] : memref<2x8x64xf32, #tpu.memory_space<vmem>>, vector<1x8x64xf32>
    %206 = vector.shape_cast %205 : vector<1x8x64xf32> to vector<8x64xf32>
    %207 = vector.shape_cast %201 : vector<8x64xf32> to vector<1x8x64xf32>
    tpu.vector_store %arg9[%c1_180, %c0_181, %c0_182], %207 {strides = array<i32>} : memref<2x8x64xf32, #tpu.memory_space<vmem>>, vector<1x8x64xf32>,
    return
  }
}

</mosaic_0001>

<bundles_post_ra>
// kernel: tile.19
= control target key start
LH: loop header
LB: loop body
LE: loop exit
PB: predicated region body
PF: predicated region fallthrough
CT: control target
= control target key end

     0   :  { %vm4_vm0 = vcmask 1047556   ;;  %s99_s14 = smov 56   ;;  %s100_s19 = smov 40   ;;  %vm6_vm1 = vcmask 64512   ;;  %vm16_vm2 = vcmask 523712   ;;  %vm26_vm3 = vcmask 458112   ;;  %s196_s0 = inlined_call_operand.vmem [shape: f32[8,8,8], index: 0, kind: input, shape index: {}]   ;;  %s197_s1 = inlined_call_operand.vmem [shape: f32[8,64], index: 1, kind: output, shape index: {}]  }
   0x1   :  { %v78_v0 = vld [vmem:[%s196_s0 + $0x7] ss:$8 sm:$0xf]   ;;  %v82_v3 = vld [vmem:[%s196_s0 + $0x5] ss:$8 sm:$0xf]  }
   0x2   :  { %v79_v1 = vld [vmem:[%s196_s0 + $0x7] ss:$8 sm:$0xf0]   ;;  %v83_v4 = vld [vmem:[%s196_s0 + $0x5] ss:$8 sm:$0xf0]  }
   0x3   :  { %v13_v2 = vsel %vm4_vm0, %v79_v1, %v78_v0  ;;  %v33_v5 = vsel %vm4_vm0, %v83_v4, %v82_v3  ;;  %v80_v6 = vld [vmem:[%s196_s0 + $0x6] ss:$8 sm:$0xf]   ;;  %v84_v9 = vld [vmem:[%s196_s0 + $0x4] ss:$8 sm:$0xf]  }
   0x4   :  { %14 = vrot.lane.b32.xlu0 %v13_v2, %s99_s14  ;;  %v81_v7 = vld [vmem:[%s196_s0 + $0x6] ss:$8 sm:$0xf0]   ;;  %34 = vrot.lane.b32.xlu1 %v33_v5, %s100_s19  ;;  %v85_v10 = vld [vmem:[%s196_s0 + $0x4] ss:$8 sm:$0xf0]  }
   0x5   :  { %v23_v8 = vsel %vm4_vm0, %v81_v7, %v80_v6  ;;  %v86_v11 = vld [vmem:[%s196_s0 + $0x3] ss:$8 sm:$0xf]   ;;  %v43_v12 = vsel %vm4_vm0, %v85_v10, %v84_v9  ;;  %s101_s28 = smov 48   ;;  %s102_s4 = smov 32   ;;  %vm36_vm4 = vcmask 392512  }
   0x6   :  { %v87_v13 = vld [vmem:[%s196_s0 + $0x3] ss:$8 sm:$0xf0]   ;;  %v88_v14 = vld [vmem:[%s196_s0 + $0x2] ss:$8 sm:$0xf]  }
   0x7   :  { %v89_v15 = vld [vmem:[%s196_s0 + $0x2] ss:$8 sm:$0xf0]   ;;  %v53_v16 = vsel %vm4_vm0, %v87_v13, %v86_v11  ;;  %v90_v17 = vld [vmem:[%s196_s0 + $0x1] ss:$8 sm:$0xf]  }
   0x8   :  { %24 = vrot.lane.b32.xlu0 %v23_v8, %s101_s28  ;;  %44 = vrot.lane.b32.xlu1 %v43_v12, %s102_s4  ;;  %v63_v18 = vsel %vm4_vm0, %v89_v15, %v88_v14  ;;  %v91_v19 = vld [vmem:[%s196_s0 + $0x1] ss:$8 sm:$0xf0]   ;;  %v2_v20 = vld [vmem:[%s196_s0] ss:$8 sm:$0xf]  }
   0x9   :  { %v3_v21 = vld [vmem:[%s196_s0] ss:$8 sm:$0xf0]   ;;  %s103_s0 = smov 24   ;;  %s104_s13 = smov 16   ;;  %v73_v23 = vsel %vm4_vm0, %v91_v19, %v90_v17  ;;  %vm46_vm5 = vcmask 326912  }
   0xa   :  { %v5_v22 = vsel %vm4_vm0, %v3_v21, %v2_v20  ;;  %s105_s16 = smov 8   ;;  %vm56_vm6 = vcmask 261312   ;;  %vm66_vm7 = vcmask 195712   ;;  %vm76_vm8 = vcmask 130112  }
   0xb   :  { %7 = vst.msk [vmem:[%s197_s1] sm:$0xff] %vm6_vm1, %v5_v22  }
   0xc   :  { %54 = vrot.lane.b32.xlu0 %v53_v16, %s103_s0  ;;  %64 = vrot.lane.b32.xlu1 %v63_v18, %s104_s13 }
  0x10   :  { %74 = vrot.lane.b32.xlu0 %v73_v23, %s105_s16 }
  0x76   :  { %v15_v24 = vpop.permute.xlu0 %14   ;;  %v35_v25 = vpop.permute.xlu1 %34  }
  0x77   :  { %17 = vst.msk [vmem:[%s197_s1] sm:$0xff] %vm16_vm2, %v15_v24  }
  0x7a   :  { %v25_v26 = vpop.permute.xlu0 %24   ;;  %v45_v27 = vpop.permute.xlu1 %44  }
  0x7b   :  { %27 = vst.msk [vmem:[%s197_s1] sm:$0xff] %vm26_vm3, %v25_v26  }
  0x7c   :  { %37 = vst.msk [vmem:[%s197_s1] sm:$0xff] %vm36_vm4, %v35_v25  }
  0x7d   :  { %47 = vst.msk [vmem:[%s197_s1] sm:$0xff] %vm46_vm5, %v45_v27  }
  0x7e   :  { %v55_v28 = vpop.permute.xlu0 %54   ;;  %v65_v29 = vpop.permute.xlu1 %64  }
  0x7f   :  { %57 = vst.msk [vmem:[%s197_s1] sm:$0xff] %vm56_vm6, %v55_v28  }
  0x80   :  { %67 = vst.msk [vmem:[%s197_s1] sm:$0xff] %vm66_vm7, %v65_v29  }
  0x82   :  { %v75_v30 = vpop.permute.xlu0 %74  }
  0x83   :  { %77 = vst.msk [vmem:[%s197_s1] sm:$0xff] %vm76_vm8, %v75_v30  }

// kernel: down_conv_forward.1
= control target key start
LH: loop header
LB: loop body
LE: loop exit
PB: predicated region body
PF: predicated region fallthrough
CT: control target
= control target key end

     0   :  { %v2361_v0 = vmov 0.0|0.0   ;;  %vm49_vm0 = vcmask 253952   ;;  %vm2362_vm1 = vmmov 0   ;;  %v2363_v6 = vmov 0.0   ;;  %s2789_s1 = inlined_call_operand.vmem [shape: f32[3,32,64], index: 1, kind: input, shape index: {}]   ;;  %s2790_s0 = inlined_call_operand.vmem [shape: f32[2,4,8,32], index: 0, kind: input, shape index: {}]   ;;  %s2791_s3 = inlined_call_operand.vmem [shape: f32[64,8], index: 3, kind: input, shape index: {}]   ;;  %s2792_s4 = inlined_call_operand.vmem [shape: f32[8,64], index: 4, kind: input, shape index: {}]   ;;  %s2793_s5 = inlined_call_operand.vmem [shape: f32[1,8], index: 5, kind: input, shape index: {}]   ;;  %s2794_s6 = inlined_call_operand.vmem [shape: f32[1,8], index: 6, kind: input, shape index: {}]   ;;  %s2795_s2 = inlined_call_operand.vmem [shape: f32[3,64,64], index: 2, kind: input, shape index: {}]   ;;  %s2796_s7 = inlined_call_operand.vmem [shape: f32[1,8], index: 7, kind: input, shape index: {}]   ;;  %s2797_s8 = inlined_call_operand.vmem [shape: f32[1,8], index: 8, kind: input, shape index: {}]   ;;  %s2798_s9 = inlined_call_operand.vmem [shape: f32[2,8,64], index: 9, kind: output, shape index: {}]  }
   0x1   :  { %2182 = vmatprep.subr.bf16.mxu0 %v2361_v0  ;;  %2200 = vmatprep.subr.bf16.mxu1 %v2361_v0  ;;  %v1733_v1 = vld [vmem:[%s2789_s1 + $0x20] sm:$0xff]  ;;  %v1734_v2 = vld [vmem:[%s2789_s1 + $0x28] sm:$0xff]  ;;  %v1735_v3 = vld [vmem:[%s2789_s1 + $0x30] sm:$0xff]  ;;  %50 = vst.msk [vmem:[#allocation2] sm:$0x1] %vm49_vm0, %v2363_v6  ;;  %vm54_vm2 = vcmask 261120  }
   0x2   :  { %v2183_v4 = vpack.c.bf16 %v1734_v2, %v1733_v1  ;;  %v1736_v5 = vld [vmem:[%s2789_s1 + $0x38] sm:$0xff]  ;;  %1914 = vmatprep.mubr.msk.f32.mxu0 %vm2362_vm1, %v2363_v6  ;;  %1947 = vmatprep.mubr.msk.f32.mxu1 %vm2362_vm1, %v2363_v6  ;;  %v32_v7 = vld [vmem:[%s2790_s0] sm:$0xff]  ;;  %51 = vst.msk [vmem:[#allocation2 + $0x10] sm:$0x1] %vm49_vm0, %v2363_v6  ;;  %52 = vst.msk [vmem:[#allocation2 + $0x9] sm:$0x1] %vm49_vm0, %v2363_v6 }
   0x3   :  { %v33_v8 = vld [vmem:[%s2790_s0 + $0x20] sm:$0xff]  ;;  %53 = vst.msk [vmem:[#allocation2 + $0x19] sm:$0x1] %vm49_vm0, %v2363_v6  ;;  %v1727_v9 = vld [vmem:[%s2790_s0 + $0x8] sm:$0xff]  ;;  %v1729_v11 = vld [vmem:[%s2790_s0 + $0x10] sm:$0xff]  ;;  %v2186_v12 = vpack.c.bf16 %v1736_v5, %v1735_v3  ;;  %vm518_vm3 = vcmask 523264  }
   0x4   :  { %v1728_v10 = vld [vmem:[%s2790_s0 + $0x28] sm:$0xff]  ;;  %2184 = vmatpush3.bf16.msra.mxu0 %v2183_v4  ;;  %2202 = vmatpush3.bf16.msra.mxu1 %v2183_v4  ;;  %v37_v13 = vmax.f32 %v32_v7, %v1727_v9  ;;  %v1730_v15 = vld [vmem:[%s2790_s0 + $0x30] sm:$0xff]  ;;  %v1731_v16 = vld [vmem:[%s2790_s0 + $0x18] sm:$0xff]  ;;  %vm719_vm4 = vcmask 64512   ;;  %vm880_vm5 = vcmask 516096  }
   0x5   :  { %v38_v14 = vmax.f32 %v33_v8, %v1728_v10  ;;  %v1732_v17 = vld [vmem:[%s2790_s0 + $0x38] sm:$0xff]  ;;  %2185 = vmatprep.subr.bf16.mxu0 %v2361_v0  ;;  %2203 = vmatprep.subr.bf16.mxu1 %v2361_v0  ;;  %v45_v18 = vmax.f32 %v1729_v11, %v1731_v16  ;;  %v58_v22 = vld [vmem:[%s2789_s1] sm:$0xff]  ;;  %v59_v23 = vld [vmem:[%s2789_s1 + $0x8] sm:$0xff]  ;;  %881 = vst.msk [vmem:[#allocation3] sm:$0x1] %vm880_vm5, %v2363_v6 }
   0x6   :  { %v46_v19 = vmax.f32 %v1730_v15, %v1732_v17  ;;  %v2189_v24 = vpack.c.bf16 %v59_v23, %v58_v22  ;;  %v60_v25 = vld [vmem:[%s2789_s1 + $0x10] sm:$0xff]  ;;  %v61_v26 = vld [vmem:[%s2789_s1 + $0x18] sm:$0xff]  ;;  %v1739_v30 = vld [vmem:[%s2789_s1 + $0x40] sm:$0xff]  ;;  %882 = vst.msk [vmem:[#allocation3 + $0x10] sm:$0x1] %vm880_vm5, %v2363_v6 }
   0x7   :  { %v47_v20 = vmax.f32 %v37_v13, %v45_v18  ;;  %v2192_v29 = vpack.c.bf16 %v61_v26, %v60_v25  ;;  %v1740_v31 = vld [vmem:[%s2789_s1 + $0x48] sm:$0xff]  ;;  %v1741_v35 = vld [vmem:[%s2789_s1 + $0x50] sm:$0xff]  ;;  %v1742_v36 = vld [vmem:[%s2789_s1 + $0x58] sm:$0xff]  ;;  %883 = vst.msk [vmem:[#allocation3 + $0x9] sm:$0x1] %vm880_vm5, %v2363_v6 }
   0x8   :  { %v48_v21 = vmax.f32 %v38_v14, %v46_v19  ;;  %2187 = vmatpush3.bf16.msra.mxu0 %v2186_v12  ;;  %2205 = vmatpush3.bf16.msra.mxu1 %v2186_v12  ;;  %v2195_v33 = vpack.c.bf16 %v1740_v31, %v1739_v30  ;;  %v2198_v37 = vpack.c.bf16 %v1742_v36, %v1741_v35  ;;  %v553_v40 = vld [vmem:[%s2791_s3] sm:$0xff]  ;;  %v554_v41 = vld [vmem:[%s2791_s3 + $0x8] sm:$0xff]  ;;  %v555_v43 = vld [vmem:[%s2791_s3 + $0x10] sm:$0xff] }
   0x9   :  { %2188 = vmatprep.subr.bf16.mxu0 %v2361_v0  ;;  %2206 = vmatprep.subr.bf16.mxu1 %v2361_v0  ;;  %55 = vst.msk [vmem:[#allocation2 + $0x1] sm:$0xff] %vm54_vm2, %v47_v20  ;;  %v2522_v42 = vpack.c.bf16 %v554_v41, %v553_v40  ;;  %v556_v44 = vld [vmem:[%s2791_s3 + $0x18] sm:$0xff]  ;;  %v557_v46 = vld [vmem:[%s2791_s3 + $0x20] sm:$0xff]  ;;  %v558_v47 = vld [vmem:[%s2791_s3 + $0x28] sm:$0xff] }
   0xa   :  { %56 = vst.msk [vmem:[#allocation2 + $0x11] sm:$0xff] %vm54_vm2, %v48_v21  ;;  %v2534_v45 = vpack.c.bf16 %v556_v44, %v555_v43  ;;  %v2546_v48 = vpack.c.bf16 %v558_v47, %v557_v46  ;;  %v559_v49 = vld [vmem:[%s2791_s3 + $0x30] sm:$0xff]  ;;  %v560_v50 = vld [vmem:[%s2791_s3 + $0x38] sm:$0xff]  ;;  %v2587_v26 = vld [vmem:[%s2792_s4] sm:$0xff] }
   0xb   :  { %v2558_v51 = vpack.c.bf16 %v560_v50, %v559_v49  ;;  %v711_v36 = vld [vmem:[%s2793_s5] sm:$0x1]  ;;  %v1752_v44 = vld [vmem:[%s2795_s2 + $0x48] sm:$0xff]  ;;  %v1753_v47 = vld [vmem:[%s2795_s2 + $0x50] sm:$0xff]  ;;  %884 = vst.msk [vmem:[#allocation3 + $0x19] sm:$0x1] %vm880_vm5, %v2363_v6 }
   0xc   :  { %v1751_v43 = vld [vmem:[%s2795_s2 + $0x40] sm:$0xff]  ;;  %v1754_v49 = vld [vmem:[%s2795_s2 + $0x58] sm:$0xff] }
   0xd   :  { %v2243_v46 = vpack.c.bf16 %v1752_v44, %v1751_v43  ;;  %v2246_v50 = vpack.c.bf16 %v1754_v49, %v1753_v47 }
  0x10   :  { %v62_v27 = vld [vmem:[#allocation2 + $0x1] sm:$0xff] }
  0x11   :  { %v296_v28 = vld [vmem:[#allocation2 + $0x11] sm:$0xff]  ;;  %1915 = vmatmul.mubr.msk.f32.vlgmr.msra.gmra.mrb[0].mxu0 %vm54_vm2, %v62_v27  ;;  %v57_v32 = vld [vmem:[#allocation2] sm:$0xff] }
  0x12   :  { %1948 = vmatmul.mubr.msk.f32.vlgmr.msra.gmra.mrb[0].mxu1 %vm54_vm2, %v296_v28  ;;  %2190 = vmatpush3.bf16.msra.mxu0 %v2189_v24  ;;  %v295_v34 = vld [vmem:[#allocation2 + $0x10] sm:$0xff]  ;;  %v214_v38 = vld [vmem:[#allocation2 + $0x2] sm:$0xff] }
  0x13   :  { %2208 = vmatpush3.bf16.msra.mxu1 %v2189_v24  ;;  %2191 = vmatprep.subr.bf16.mxu0 %v2361_v0  ;;  %v443_v39 = vld [vmem:[#allocation2 + $0x12] sm:$0xff] }
  0x14   :  { %2209 = vmatprep.subr.bf16.mxu1 %v2361_v0  ;;  %1925 = vmatprep.mubr.msk.f32.mxu0 %vm2362_vm1, %v2363_v6 }
  0x15   :  { %1958 = vmatprep.mubr.msk.f32.mxu1 %vm2362_vm1, %v2363_v6 }
  0x16   :  { %2193 = vmatpush3.bf16.msra.mxu0 %v2192_v29 }
  0x17   :  { %2211 = vmatpush3.bf16.msra.mxu1 %v2192_v29  ;;  %2194 = vmatprep.subr.bf16.mxu0 %v2361_v0 }
  0x18   :  { %2212 = vmatprep.subr.bf16.mxu1 %v2361_v0 }
  0x19   :  { %1926 = vmatmul.mubr.msk.f32.vlgmr.msra.gmra.mrb[0].mxu0 %vm54_vm2, %v57_v32 }
  0x1a   :  { %1959 = vmatmul.mubr.msk.f32.vlgmr.msra.gmra.mrb[0].mxu1 %vm54_vm2, %v295_v34  ;;  %2196 = vmatpush3.bf16.msra.mxu0 %v2195_v33 }
  0x1b   :  { %2214 = vmatpush3.bf16.msra.mxu1 %v2195_v33  ;;  %2197 = vmatprep.subr.bf16.mxu0 %v2361_v0 }
  0x1c   :  { %2215 = vmatprep.subr.bf16.mxu1 %v2361_v0  ;;  %1936 = vmatprep.mubr.msk.f32.mxu0 %vm2362_vm1, %v2363_v6 }
  0x1d   :  { %1969 = vmatprep.mubr.msk.f32.mxu1 %vm2362_vm1, %v2363_v6 }
  0x1e   :  { %2199 = vmatpush3.bf16.msra.mxu0 %v2198_v37 }
  0x1f   :  { %2217 = vmatpush3.bf16.msra.mxu1 %v2198_v37  ;;  %2218 = vmatprep.subr.bf16.mxu0 %v2361_v0 }
  0x20   :  { %2230 = vmatprep.subr.bf16.mxu1 %v2361_v0 }
  0x21   :  { %1937 = vmatmul.mubr.msk.f32.vlgmr.msra.gmra.mrb[0].mxu0 %vm54_vm2, %v214_v38 }
  0x22   :  { %1970 = vmatmul.mubr.msk.f32.vlgmr.msra.gmra.mrb[0].mxu1 %vm54_vm2, %v443_v39  ;;  %1988 = vmatprep.mubr.msk.f32.mxu0 %vm2362_vm1, %v2363_v6  ;;  %v715_v39 = vld [vmem:[%s2794_s6] sm:$0x1] }
  0x23   :  { %2007 = vmatprep.mubr.msk.f32.mxu1 %vm2362_vm1, %v2363_v6  ;;  %2220 = vmatpush3.bf16.msra.mxu0 %v2522_v42 }
  0x24   :  { %2232 = vmatpush3.bf16.msra.mxu1 %v2522_v42  ;;  %2221 = vmatprep.subr.bf16.mxu0 %v2361_v0 }
  0x25   :  { %2233 = vmatprep.subr.bf16.mxu1 %v2361_v0 }
  0x27   :  { %2223 = vmatpush3.bf16.msra.mxu0 %v2534_v45 }
  0x28   :  { %2235 = vmatpush3.bf16.msra.mxu1 %v2534_v45  ;;  %2224 = vmatprep.subr.bf16.mxu0 %v2361_v0 }
  0x29   :  { %2236 = vmatprep.subr.bf16.mxu1 %v2361_v0 }
  0x2b   :  { %2226 = vmatpush3.bf16.msra.mxu0 %v2546_v48 }
  0x2c   :  { %2238 = vmatpush3.bf16.msra.mxu1 %v2546_v48  ;;  %2227 = vmatprep.subr.bf16.mxu0 %v2361_v0 }
  0x2d   :  { %2239 = vmatprep.subr.bf16.mxu1 %v2361_v0 }
  0x2f   :  { %2229 = vmatpush3.bf16.msra.mxu0 %v2558_v51 }
  0x30   :  { %2241 = vmatpush3.bf16.msra.mxu1 %v2558_v51  ;;  %2010 = vmatprep.subr.mxu0 %v2363_v6 }
  0x31   :  { %2015 = vmatprep.subr.mxu1 %v2363_v6 }
  0xf4   :  { %v2564_v52 = vpop.f32.mrb[0].mxu0 }
  0xf5   :  { %v2566_v53 = vpop.f32.mrb[0].mxu1  ;;  %v519_v54 = vsel %vm518_vm3, %v2564_v52, 0.0  ;;  %v527_v55 = vmul.f32 %v2564_v52, %v2564_v52  ;;  %v1938_v58 = vpop.f32.mrb[1].mxu0 }
  0xf6   :  { %v536_v56 = vsel %vm518_vm3, %v2566_v53, 0.0  ;;  %v544_v57 = vmul.f32 %v2566_v53, %v2566_v53  ;;  %v1971_v59 = vpop.f32.mrb[1].mxu1  ;;  %v520_v60 = vrot.slane %v519_v54, 4  ;;  %v1758_v58 = vld [vmem:[%s2795_s2 + $0x78] sm:$0xff] }
  0xf7   :  { %v537_v61 = vrot.slane %v536_v56, 4  ;;  %v528_v62 = vsel %vm518_vm3, %v527_v55, 0.0  ;;  %v1756_v55 = vld [vmem:[%s2795_s2 + $0x68] sm:$0xff] }
  0xf8   :  { %v545_v63 = vsel %vm518_vm3, %v544_v57, 0.0  ;;  %v521_v1 = vadd.f32 %v520_v60, %v519_v54  ;;  %v529_v2 = vrot.slane %v528_v62, 4  ;;  %v1755_v54 = vld [vmem:[%s2795_s2 + $0x60] sm:$0xff]  ;;  %v1757_v57 = vld [vmem:[%s2795_s2 + $0x70] sm:$0xff]  ;;  %v866_v60 = vlaneseq }
  0xf9   :  { %v538_v3 = vadd.f32 %v537_v61, %v536_v56  ;;  %v546_v4 = vrot.slane %v545_v63, 4  ;;  %v2249_v56 = vpack.c.bf16 %v1756_v55, %v1755_v54  ;;  %v2252_v59 = vpack.c.bf16 %v1758_v58, %v1757_v57 }
  0xfa   :  { %v522_v5 = vrot.slane %v521_v1, 2  ;;  %v530_v7 = vadd.f32 %v529_v2, %v528_v62  ;;  %v867_v61 = vshrl.u32 %v866_v60, 7 }
  0xfb   :  { %v539_v8 = vrot.slane %v538_v3, 2  ;;  %v547_v9 = vadd.f32 %v546_v4, %v545_v63 }
  0xfc   :  { %v523_v10 = vadd.f32 %v522_v5, %v521_v1  ;;  %v531_v11 = vrot.slane %v530_v7, 2  ;;  %v2641_v62 = vsub.s32 0, %v867_v61 }
  0xfd   :  { %v540_v12 = vadd.f32 %v539_v8, %v538_v3  ;;  %v548_v13 = vrot.slane %v547_v9, 2 }
  0xfe   :  { %v524_v14 = vrot.slane %v523_v10, 1  ;;  %v532_v15 = vadd.f32 %v531_v11, %v530_v7 }
  0xff   :  { %v541_v16 = vrot.slane %v540_v12, 1  ;;  %v549_v17 = vadd.f32 %v548_v13, %v547_v9  ;;  %v889_v13 = vld [vmem:[%s2795_s2] sm:$0xff] }
 0x100   :  { %v525_v18 = vadd.f32 %v524_v14, %v523_v10  ;;  %v533_v19 = vrot.slane %v532_v15, 1  ;;  %v891_v14 = vld [vmem:[%s2795_s2 + $0x10] sm:$0xff] }
 0x101   :  { %v542_v20 = vadd.f32 %v541_v16, %v540_v12  ;;  %v550_v21 = vrot.slane %v549_v17, 1 }
 0x102   :  { %v534_v22 = vadd.f32 %v533_v19, %v532_v15  ;;  %v892_v15 = vld [vmem:[%s2795_s2 + $0x18] sm:$0xff]  ;;  %v893_v19 = vld [vmem:[%s2795_s2 + $0x20] sm:$0xff] }
 0x103   :  { %v543_v23 = vadd.f32 %v542_v20, %v525_v18  ;;  %v551_v24 = vadd.f32 %v550_v21, %v549_v17  ;;  %v2258_v18 = vpack.c.bf16 %v892_v15, %v891_v14  ;;  %v894_v20 = vld [vmem:[%s2795_s2 + $0x28] sm:$0xff] }
 0x104   :  { %v2261_v21 = vpack.c.bf16 %v894_v20, %v893_v19 }
 0x105   :  { %1989 = vmatmul.mubr.msk.f32.vlgmr.msra.gmra.mrb[2].mxu0 %vm518_vm3, %v543_v23  ;;  %v552_v25 = vadd.f32 %v551_v24, %v534_v22  ;;  %v895_v22 = vld [vmem:[%s2795_s2 + $0x30] sm:$0xff]  ;;  %v896_v23 = vld [vmem:[%s2795_s2 + $0x38] sm:$0xff] }
 0x106   :  { %2012 = vmatprep.mubr.msk.f32.mxu0 %vm2362_vm1, %v2363_v6  ;;  %2011 = vmatpush3.msra.mxu0 %v2587_v26  ;;  %v2264_v24 = vpack.c.bf16 %v896_v23, %v895_v22 }
 0x107   :  { %2008 = vmatmul.mubr.msk.f32.vlgmr.msra.gmra.mrb[2].mxu1 %vm518_vm3, %v552_v25  ;;  %2242 = vmatprep.subr.bf16.mxu0 %v2361_v0  ;;  %v1761_v25 = vld [vmem:[%s2795_s2 + $0x80] sm:$0xff] }
 0x108   :  { %2017 = vmatprep.mubr.msk.f32.mxu1 %vm2362_vm1, %v2363_v6  ;;  %2016 = vmatpush3.msra.mxu1 %v2587_v26 }
 0x109   :  { %2278 = vmatprep.subr.bf16.mxu1 %v2361_v0 }
 0x1d8   :  { %v630_v27 = vpop.f32.mrb[2].mxu0 }
 0x1d9   :  { %v707_v28 = vmul.f32 0.0078125, %v630_v27  ;;  %v1990_v29 = vpop.f32.mrb[3].mxu0  ;;  %v1762_v27 = vld [vmem:[%s2795_s2 + $0x88] sm:$0xff] }
 0x1da   :  { %v703_v30 = vpop.f32.mrb[2].mxu1  ;;  %v1763_v29 = vld [vmem:[%s2795_s2 + $0x90] sm:$0xff] }
 0x1db   :  { %v709_v31 = vmul.f32 %v707_v28, %v707_v28  ;;  %v708_v32 = vmul.f32 0.0078125, %v703_v30  ;;  %v2009_v33 = vpop.f32.mrb[3].mxu1  ;;  %v1764_v30 = vld [vmem:[%s2795_s2 + $0x98] sm:$0xff] }
 0x1dc   :  { %v2270_v33 = vpack.c.bf16 %v1764_v30, %v1763_v29 }
 0x1dd   :  { %v710_v34 = vsub.f32 %v708_v32, %v709_v31 }
 0x1df   :  { %v712_v35 = vadd.f32 1e-05, %v710_v34  ;;  %v1765_v34 = vld [vmem:[%s2795_s2 + $0xa0] sm:$0xff] }
 0x1e1   :  { %2357 = vrsqrt.f32 %v712_v35  ;;  %v1766_v35 = vld [vmem:[%s2795_s2 + $0xa8] sm:$0xff] }
 0x1eb   :  { %v2358_v37 = vpop.eup %2357 }
 0x1ec   :  { %v714_v38 = vmul.f32 %v2358_v37, %v711_v36  ;;  %v2273_v36 = vpack.c.bf16 %v1766_v35, %v1765_v34  ;;  %v1767_v37 = vld [vmem:[%s2795_s2 + $0xb0] sm:$0xff] }
 0x1ee   :  { %2013 = vmatmul.mubr.msk.f32.vlgmr.msra.gmra.mrb[4].mxu0 %vm719_vm4, %v714_v38  ;;  %v716_v40 = vmul.f32 %v714_v38, %v707_v28  ;;  %v2267_v28 = vpack.c.bf16 %v1762_v27, %v1761_v25  ;;  %v1768_v38 = vld [vmem:[%s2795_s2 + $0xb8] sm:$0xff]  ;;  %v1552_v25 = vld [vmem:[%s2796_s7] sm:$0x1] }
 0x1ef   :  { %2036 = vmatprep.mubr.msk.f32.mxu0 %vm2362_vm1, %v2363_v6  ;;  %2244 = vmatpush3.bf16.msra.mxu0 %v2243_v46 }
 0x1f0   :  { %v717_v41 = vsub.f32 %v715_v39, %v716_v40  ;;  %2245 = vmatprep.subr.bf16.mxu0 %v2361_v0  ;;  %v2276_v39 = vpack.c.bf16 %v1768_v38, %v1767_v37 }
 0x1f2   :  { %2018 = vmatmul.mubr.msk.f32.vlgmr.msra.gmra.mrb[4].mxu1 %vm719_vm4, %v717_v41 }
 0x1f3   :  { %2093 = vmatprep.mubr.msk.f32.mxu1 %vm2362_vm1, %v2363_v6  ;;  %2280 = vmatpush3.bf16.msra.mxu1 %v2243_v46 }
 0x1f4   :  { %2281 = vmatprep.subr.bf16.mxu1 %v2361_v0  ;;  %2247 = vmatpush3.bf16.msra.mxu0 %v2246_v50 }
 0x1f5   :  { %2248 = vmatprep.subr.bf16.mxu0 %v2361_v0 }
 0x1f7   :  { %2283 = vmatpush3.bf16.msra.mxu1 %v2246_v50 }
 0x1f8   :  { %2284 = vmatprep.subr.bf16.mxu1 %v2361_v0  ;;  %2250 = vmatpush3.bf16.msra.mxu0 %v2249_v56 }
 0x1f9   :  { %2251 = vmatprep.subr.bf16.mxu0 %v2361_v0 }
 0x1fb   :  { %2286 = vmatpush3.bf16.msra.mxu1 %v2249_v56 }
 0x1fc   :  { %2287 = vmatprep.subr.bf16.mxu1 %v2361_v0  ;;  %2253 = vmatpush3.bf16.msra.mxu0 %v2252_v59 }
 0x1fd   :  { %2254 = vmatprep.subr.bf16.mxu0 %v2361_v0 }
 0x1ff   :  { %2289 = vmatpush3.bf16.msra.mxu1 %v2252_v59 }
 0x200   :  { %2290 = vmatprep.subr.bf16.mxu1 %v2361_v0 }
 0x2c1   :  { %v789_v63 = vpop.f32.mrb[4].mxu0 }
 0x2c2   :  { %v869_v1 = vrot.slane %v789_v63, %v2641_v62  ;;  %v2014_v2 = vpop.f32.mrb[5].mxu0 }
 0x2c4   :  { %v870_v3 = vmul.f32 %v869_v1, %v2564_v52  ;;  %v877_v4 = vmul.f32 %v869_v1, %v2566_v53  ;;  %v890_v52 = vld [vmem:[%s2795_s2 + $0x8] sm:$0xff] }
 0x2c5   :  { %v862_v5 = vpop.f32.mrb[4].mxu1  ;;  %v2255_v53 = vpack.c.bf16 %v890_v52, %v889_v13 }
 0x2c6   :  { %v874_v7 = vrot.slane %v862_v5, %v2641_v62  ;;  %v2019_v8 = vpop.f32.mrb[5].mxu1 }
 0x2c8   :  { %v875_v9 = vadd.f32 %v874_v7, %v870_v3  ;;  %v878_v10 = vadd.f32 %v877_v4, %v874_v7 }
 0x2ca   :  { %v876_v11 = vmax.f32 %v875_v9, 0.0  ;;  %v879_v12 = vmax.f32 %v878_v10, 0.0 }
 0x2cc   :  { %885 = vst.msk [vmem:[#allocation3 + $0x1] sm:$0xff] %vm518_vm3, %v876_v11  ;;  %887 = vst.msk [vmem:[#allocation3 + $0x11] sm:$0xff] %vm518_vm3, %v879_v12 }
 0x2d3   :  { %v897_v16 = vld [vmem:[#allocation3 + $0x1] sm:$0xff]  ;;  %v1138_v17 = vld [vmem:[#allocation3 + $0x11] sm:$0xff] }
 0x2d4   :  { %2037 = vmatmul.mubr.msk.f32.vlgmr.msra.gmra.mrb[6].mxu0 %vm518_vm3, %v897_v16  ;;  %2094 = vmatmul.mubr.msk.f32.vlgmr.msra.gmra.mrb[6].mxu1 %vm518_vm3, %v1138_v17  ;;  %v888_v31 = vld [vmem:[#allocation3] sm:$0xff]  ;;  %v1137_v32 = vld [vmem:[#allocation3 + $0x10] sm:$0xff] }
 0x2d5   :  { %2256 = vmatpush3.bf16.msra.mxu0 %v2255_v53  ;;  %2292 = vmatpush3.bf16.msra.mxu1 %v2255_v53  ;;  %v1053_v40 = vld [vmem:[#allocation3 + $0x2] sm:$0xff]  ;;  %v1285_v41 = vld [vmem:[#allocation3 + $0x12] sm:$0xff] }
 0x2d6   :  { %2257 = vmatprep.subr.bf16.mxu0 %v2361_v0  ;;  %2293 = vmatprep.subr.bf16.mxu1 %v2361_v0 }
 0x2d7   :  { %2055 = vmatprep.mubr.msk.f32.mxu0 %vm2362_vm1, %v2363_v6  ;;  %2112 = vmatprep.mubr.msk.f32.mxu1 %vm2362_vm1, %v2363_v6 }
 0x2d9   :  { %2259 = vmatpush3.bf16.msra.mxu0 %v2258_v18  ;;  %2295 = vmatpush3.bf16.msra.mxu1 %v2258_v18 }
 0x2da   :  { %2260 = vmatprep.subr.bf16.mxu0 %v2361_v0  ;;  %2296 = vmatprep.subr.bf16.mxu1 %v2361_v0 }
 0x2dd   :  { %2262 = vmatpush3.bf16.msra.mxu0 %v2261_v21  ;;  %2298 = vmatpush3.bf16.msra.mxu1 %v2261_v21 }
 0x2de   :  { %2263 = vmatprep.subr.bf16.mxu0 %v2361_v0  ;;  %2299 = vmatprep.subr.bf16.mxu1 %v2361_v0 }
 0x2e1   :  { %2265 = vmatpush3.bf16.msra.mxu0 %v2264_v24  ;;  %2301 = vmatpush3.bf16.msra.mxu1 %v2264_v24 }
 0x2e2   :  { %2266 = vmatprep.subr.bf16.mxu0 %v2361_v0  ;;  %2302 = vmatprep.subr.bf16.mxu1 %v2361_v0 }
 0x2e4   :  { %2056 = vmatmul.mubr.msk.f32.vlgmr.msra.gmra.mrb[6].mxu0 %vm518_vm3, %v888_v31  ;;  %2113 = vmatmul.mubr.msk.f32.vlgmr.msra.gmra.mrb[6].mxu1 %vm518_vm3, %v1137_v32 }
 0x2e5   :  { %2268 = vmatpush3.bf16.msra.mxu0 %v2267_v28  ;;  %2304 = vmatpush3.bf16.msra.mxu1 %v2267_v28 }
 0x2e6   :  { %2269 = vmatprep.subr.bf16.mxu0 %v2361_v0  ;;  %2305 = vmatprep.subr.bf16.mxu1 %v2361_v0 }
 0x2e7   :  { %2074 = vmatprep.mubr.msk.f32.mxu0 %vm2362_vm1, %v2363_v6  ;;  %2131 = vmatprep.mubr.msk.f32.mxu1 %vm2362_vm1, %v2363_v6 }
 0x2e9   :  { %2271 = vmatpush3.bf16.msra.mxu0 %v2270_v33  ;;  %2307 = vmatpush3.bf16.msra.mxu1 %v2270_v33 }
 0x2ea   :  { %2272 = vmatprep.subr.bf16.mxu0 %v2361_v0  ;;  %2308 = vmatprep.subr.bf16.mxu1 %v2361_v0 }
 0x2ed   :  { %2274 = vmatpush3.bf16.msra.mxu0 %v2273_v36  ;;  %2310 = vmatpush3.bf16.msra.mxu1 %v2273_v36 }
 0x2ee   :  { %2275 = vmatprep.subr.bf16.mxu0 %v2361_v0  ;;  %2311 = vmatprep.subr.bf16.mxu1 %v2361_v0 }
 0x2f1   :  { %2277 = vmatpush3.bf16.msra.mxu0 %v2276_v39  ;;  %2313 = vmatpush3.bf16.msra.mxu1 %v2276_v39 }
 0x2f2   :  { %2314 = vmatprep.subr.bf16.mxu0 %v2361_v0  ;;  %2326 = vmatprep.subr.bf16.mxu1 %v2361_v0 }
 0x2f4   :  { %2075 = vmatmul.mubr.msk.f32.vlgmr.msra.gmra.mrb[6].mxu0 %vm518_vm3, %v1053_v40  ;;  %2132 = vmatmul.mubr.msk.f32.vlgmr.msra.gmra.mrb[6].mxu1 %vm518_vm3, %v1285_v41 }
 0x2f5   :  { %2316 = vmatpush3.bf16.msra.mxu0 %v2522_v42  ;;  %2328 = vmatpush3.bf16.msra.mxu1 %v2522_v42 }
 0x2f6   :  { %2317 = vmatprep.subr.bf16.mxu0 %v2361_v0  ;;  %2329 = vmatprep.subr.bf16.mxu1 %v2361_v0 }
 0x2f7   :  { %2150 = vmatprep.mubr.msk.f32.mxu0 %vm2362_vm1, %v2363_v6  ;;  %2169 = vmatprep.mubr.msk.f32.mxu1 %vm2362_vm1, %v2363_v6 }
 0x2f9   :  { %2319 = vmatpush3.bf16.msra.mxu0 %v2534_v45  ;;  %2331 = vmatpush3.bf16.msra.mxu1 %v2534_v45 }
 0x2fa   :  { %2320 = vmatprep.subr.bf16.mxu0 %v2361_v0  ;;  %2332 = vmatprep.subr.bf16.mxu1 %v2361_v0 }
 0x2fd   :  { %2322 = vmatpush3.bf16.msra.mxu0 %v2546_v48  ;;  %2334 = vmatpush3.bf16.msra.mxu1 %v2546_v48 }
 0x2fe   :  { %2323 = vmatprep.subr.bf16.mxu0 %v2361_v0  ;;  %2335 = vmatprep.subr.bf16.mxu1 %v2361_v0 }
 0x301   :  { %2325 = vmatpush3.bf16.msra.mxu0 %v2558_v51  ;;  %2337 = vmatpush3.bf16.msra.mxu1 %v2558_v51 }
 0x302   :  { %2172 = vmatprep.subr.mxu0 %v2363_v6  ;;  %2177 = vmatprep.subr.mxu1 %v2363_v6 }
 0x3c7   :  { %v2747_v42 = vpop.f32.mrb[6].mxu0  ;;  %v2749_v45 = vpop.f32.mrb[6].mxu1 }
 0x3c8   :  { %v1360_v43 = vsel %vm518_vm3, %v2747_v42, 0.0  ;;  %v1368_v48 = vmul.f32 %v2747_v42, %v2747_v42  ;;  %v1377_v0 = vsel %vm518_vm3, %v2749_v45, 0.0  ;;  %v1385_v51 = vmul.f32 %v2749_v45, %v2749_v45  ;;  %v2076_v44 = vpop.f32.mrb[7].mxu0  ;;  %v2133_v46 = vpop.f32.mrb[7].mxu1 }
 0x3c9   :  { %v1361_v47 = vrot.slane %v1360_v43, 4  ;;  %v1378_v49 = vrot.slane %v1377_v0, 4 }
 0x3ca   :  { %v1369_v50 = vsel %vm518_vm3, %v1368_v48, 0.0  ;;  %v1386_v54 = vsel %vm518_vm3, %v1385_v51, 0.0 }
 0x3cb   :  { %v1362_v55 = vadd.f32 %v1361_v47, %v1360_v43  ;;  %v1370_v56 = vrot.slane %v1369_v50, 4  ;;  %v1379_v57 = vadd.f32 %v1378_v49, %v1377_v0  ;;  %v1387_v58 = vrot.slane %v1386_v54, 4 }
 0x3cd   :  { %v1363_v59 = vrot.slane %v1362_v55, 2  ;;  %v1371_v60 = vadd.f32 %v1370_v56, %v1369_v50  ;;  %v1380_v61 = vrot.slane %v1379_v57, 2  ;;  %v1388_v63 = vadd.f32 %v1387_v58, %v1386_v54 }
 0x3cf   :  { %v1364_v1 = vadd.f32 %v1363_v59, %v1362_v55  ;;  %v1372_v2 = vrot.slane %v1371_v60, 2  ;;  %v1381_v3 = vadd.f32 %v1380_v61, %v1379_v57  ;;  %v1389_v4 = vrot.slane %v1388_v63, 2 }
 0x3d1   :  { %v1365_v5 = vrot.slane %v1364_v1, 1  ;;  %v1373_v7 = vadd.f32 %v1372_v2, %v1371_v60  ;;  %v1382_v8 = vrot.slane %v1381_v3, 1  ;;  %v1390_v9 = vadd.f32 %v1389_v4, %v1388_v63 }
 0x3d3   :  { %v1366_v10 = vadd.f32 %v1365_v5, %v1364_v1  ;;  %v1374_v11 = vrot.slane %v1373_v7, 1  ;;  %v1383_v12 = vadd.f32 %v1382_v8, %v1381_v3  ;;  %v1391_v13 = vrot.slane %v1390_v9, 1 }
 0x3d5   :  { %v1375_v52 = vadd.f32 %v1374_v11, %v1373_v7  ;;  %v1384_v53 = vadd.f32 %v1383_v12, %v1366_v10  ;;  %v1392_v14 = vadd.f32 %v1391_v13, %v1390_v9 }
 0x3d7   :  { %2151 = vmatmul.mubr.msk.f32.vlgmr.msra.gmra.mrb[8].mxu0 %vm518_vm3, %v1384_v53  ;;  %v1393_v15 = vadd.f32 %v1392_v14, %v1375_v52 }
 0x3d8   :  { %2173 = vmatpush3.msra.mxu0 %v2587_v26  ;;  %2174 = vmatprep.mubr.msk.f32.mxu0 %vm2362_vm1, %v2363_v6 }
 0x3d9   :  { %2170 = vmatmul.mubr.msk.f32.vlgmr.msra.gmra.mrb[8].mxu1 %vm518_vm3, %v1393_v15 }
 0x3da   :  { %2178 = vmatpush3.msra.mxu1 %v2587_v26  ;;  %2179 = vmatprep.mubr.msk.f32.mxu1 %vm2362_vm1, %v2363_v6  ;;  %v1556_v6 = vld [vmem:[%s2797_s8] sm:$0x1] }
 0x4aa   :  { %v1471_v16 = vpop.f32.mrb[8].mxu0 }
 0x4ab   :  { %v1548_v17 = vmul.f32 0.0078125, %v1471_v16  ;;  %v2152_v18 = vpop.f32.mrb[9].mxu0 }
 0x4ac   :  { %v1544_v19 = vpop.f32.mrb[8].mxu1 }
 0x4ad   :  { %v1550_v20 = vmul.f32 %v1548_v17, %v1548_v17  ;;  %v1549_v21 = vmul.f32 0.0078125, %v1544_v19  ;;  %v2171_v22 = vpop.f32.mrb[9].mxu1 }
 0x4af   :  { %v1551_v23 = vsub.f32 %v1549_v21, %v1550_v20 }
 0x4b1   :  { %v1553_v24 = vadd.f32 1e-05, %v1551_v23 }
 0x4b3   :  { %2359 = vrsqrt.f32 %v1553_v24 }
 0x4bd   :  { %v2360_v27 = vpop.eup %2359 }
 0x4be   :  { %v1555_v28 = vmul.f32 %v2360_v27, %v1552_v25 }
 0x4c0   :  { %2175 = vmatmul.mubr.msk.f32.vlgmr.msra.gmra.mrb[10].mxu0 %vm719_vm4, %v1555_v28  ;;  %v1557_v26 = vmul.f32 %v1555_v28, %v1548_v17 }
 0x4c2   :  { %v1558_v29 = vsub.f32 %v1556_v6, %v1557_v26 }
 0x4c4   :  { %2180 = vmatmul.mubr.msk.f32.vlgmr.msra.gmra.mrb[10].mxu1 %vm719_vm4, %v1558_v29 }
 0x593   :  { %v1629_v30 = vpop.f32.mrb[10].mxu0 }
 0x594   :  { %v1709_v31 = vrot.slane %v1629_v30, %v2641_v62  ;;  %v2176_v32 = vpop.f32.mrb[11].mxu0 }
 0x596   :  { %v1710_v33 = vmul.f32 %v1709_v31, %v2747_v42  ;;  %v1717_v34 = vmul.f32 %v1709_v31, %v2749_v45 }
 0x597   :  { %v1702_v35 = vpop.f32.mrb[10].mxu1 }
 0x598   :  { %v1714_v36 = vrot.slane %v1702_v35, %v2641_v62  ;;  %v2181_v37 = vpop.f32.mrb[11].mxu1 }
 0x59a   :  { %v1715_v38 = vadd.f32 %v1714_v36, %v1710_v33  ;;  %v1718_v39 = vadd.f32 %v1717_v34, %v1714_v36 }
 0x59c   :  { %v1716_v40 = vmax.f32 %v1715_v38, 0.0  ;;  %v1719_v41 = vmax.f32 %v1718_v39, 0.0 }
 0x59e   :  { %1720 = vst.msk [vmem:[%s2798_s9] sm:$0xff] %vm518_vm3, %v1716_v40  ;;  %1777 = vst.msk [vmem:[%s2798_s9 + $0x8] sm:$0xff] %vm518_vm3, %v1719_v41 }

</bundles_post_ra>
